<compile_context>
chip_gen: v7x
topology: tpu7x:2x2x1
jax: 0.10.0
libtpu: 0.0.40
codegen_flags: <defaults>
</compile_context>

<pallas_src>
import functools

import jax
import jax.numpy as jnp
from jax.experimental import pallas as pl
from jax.experimental.pallas import tpu as pltpu


def _round_up(n, m):
    return ((n + m - 1) // m) * m


def _pad2(a, rows, cols):
    return jnp.pad(a, ((0, rows - a.shape[0]), (0, cols - a.shape[1])))


def _make_kernel(hp):
    """hp = padded hidden size (multiple of 128); fused hidden width is 2*hp."""

    def kernel(x_ref, w_enc_ref, b_enc_ref, w1_ref, b1_ref, w2_ref, b2_ref, out_ref):
        # --- state encoder: Linear + ReLU (MXU, f32 accumulate) ---
        enc = jnp.dot(x_ref[...], w_enc_ref[...], preferred_element_type=jnp.float32)
        enc = jnp.maximum(enc + b_enc_ref[...], 0.0)                    # f32 bias/ReLU (VPU)

        # --- fused heads, layer 1: one (E, 2H) matmul instead of two (E, H) ---
        h = jnp.dot(enc.astype(w1_ref.dtype), w1_ref[...],
                    preferred_element_type=jnp.float32)
        h = jnp.maximum(h + b1_ref[...], 0.0)                           # (TB, 2*hp) f32

        # --- fused heads, layer 2: VPU multiply + XLU lane-reduce (no N=1 MXU matmuls) ---
        prod = h * w2_ref[...]                                          # (TB, 2*hp) * (1, 2*hp)
        ext = jnp.sum(prod[:, :hp], axis=-1, keepdims=True) + b2_ref[:, 0:1]
        itn = jnp.sum(prod[:, hp:], axis=-1, keepdims=True) + b2_ref[:, 1:2]

        # single (TB, 2) output slab: ext in column 0, int in column 1
        out_ref[:, 0:1] = ext.astype(out_ref.dtype)
        out_ref[:, 1:2] = itn.astype(out_ref.dtype)

    return kernel


def im_critic_forward(states, params, *, block_batch=512, compute_dtype=jnp.float32):
    """states: (B, S) float32.  Returns (ext_value, int_value), each (B, 1) float32.

    compute_dtype: dtype of the matmul operands (use jnp.bfloat16 on v6e/v7x to halve
    weight/activation DMA; accumulation is always float32).
    """
    f32 = jnp.float32
    B, S = states.shape
    E = params["w_enc"].shape[1]
    H = params["w1e"].shape[1]

    # Pad all feature dims to 128 lanes; pad batch to a multiple of the batch tile.
    Sp = _round_up(S, 128)
    Ep = _round_up(E, 128)
    Hp = _round_up(H, 128)
    TB = _round_up(min(block_batch, _round_up(B, 8)), 8)
    Bp = _round_up(B, TB)

    x = jnp.pad(states, ((0, Bp - B), (0, Sp - S))).astype(compute_dtype)

    # Encoder weights (matmul operands in compute_dtype, biases in f32).
    w_enc = _pad2(params["w_enc"].astype(f32), Sp, Ep).astype(compute_dtype)
    b_enc = _pad2(params["b_enc"].astype(f32), 1, Ep)

    # Fused head layer 1: (Ep, 2*Hp) weight, (1, 2*Hp) bias.
    w1 = jnp.concatenate(
        [_pad2(params["w1e"].astype(f32), Ep, Hp),
         _pad2(params["w1i"].astype(f32), Ep, Hp)], axis=1).astype(compute_dtype)
    b1 = jnp.concatenate(
        [_pad2(params["b1e"].astype(f32), 1, Hp),
         _pad2(params["b1i"].astype(f32), 1, Hp)], axis=1)

    # Fused head layer 2 as a (1, 2*Hp) row (VPU multiply + reduce) and a (1, 2) bias.
    w2 = jnp.concatenate(
        [_pad2(params["w2e"].astype(f32).T, 1, Hp),
         _pad2(params["w2i"].astype(f32).T, 1, Hp)], axis=1)
    b2 = jnp.concatenate([params["b2e"].astype(f32), params["b2i"].astype(f32)], axis=1)

    grid = (Bp // TB,)
    kernel = _make_kernel(Hp)

    # States stream per grid step; every weight/bias uses a constant block index so it is
    # DMA'd once and stays VMEM-resident across the whole grid.
    in_specs = [
        pl.BlockSpec((TB, Sp), lambda i: (i, 0)),       # states
        pl.BlockSpec((Sp, Ep), lambda i: (0, 0)),       # w_enc
        pl.BlockSpec((1, Ep), lambda i: (0, 0)),        # b_enc
        pl.BlockSpec((Ep, 2 * Hp), lambda i: (0, 0)),   # fused w1
        pl.BlockSpec((1, 2 * Hp), lambda i: (0, 0)),    # fused b1
        pl.BlockSpec((1, 2 * Hp), lambda i: (0, 0)),    # fused w2 row
        pl.BlockSpec((1, 2), lambda i: (0, 0)),         # fused b2
    ]
    out_specs = pl.BlockSpec((TB, 2), lambda i: (i, 0))
    out_shape = jax.ShapeDtypeStruct((Bp, 2), jnp.float32)

    out = pl.pallas_call(
        kernel,
        grid=grid,
        in_specs=in_specs,
        out_specs=out_specs,
        out_shape=out_shape,
        compiler_params=pltpu.CompilerParams(dimension_semantics=("parallel",)),
    )(x, w_enc, b_enc, w1, b1, w2, b2)

    ext = out[:B, 0:1]
    itn = out[:B, 1:2]
    return ext, itn


def init_params(key, state_dim, enc_dim, hidden_size):
    ks = jax.random.split(key, 10)

    def lin(kw, kb, fan_in, fan_out):
        bound = 1.0 / jnp.sqrt(fan_in)
        w = jax.random.uniform(kw, (fan_in, fan_out), jnp.float32, -bound, bound)
        b = jax.random.uniform(kb, (1, fan_out), jnp.float32, -bound, bound)
        return w, b

    w_enc, b_enc = lin(ks[0], ks[1], state_dim, enc_dim)
    w1e, b1e = lin(ks[2], ks[3], enc_dim, hidden_size)
    w2e, b2e = lin(ks[4], ks[5], hidden_size, 1)
    w1i, b1i = lin(ks[6], ks[7], enc_dim, hidden_size)
    w2i, b2i = lin(ks[8], ks[9], hidden_size, 1)
    return dict(w_enc=w_enc, b_enc=b_enc,
                w1e=w1e, b1e=b1e, w2e=w2e, b2e=b2e,
                w1i=w1i, b1i=b1i, w2i=w2i, b2i=b2i)


def reference_forward(states, p):
    enc = jnp.maximum(states @ p["w_enc"] + p["b_enc"], 0.0)
    he = jnp.maximum(enc @ p["w1e"] + p["b1e"], 0.0)
    ext = he @ p["w2e"] + p["b2e"]
    hi = jnp.maximum(enc @ p["w1i"] + p["b1i"], 0.0)
    itn = hi @ p["w2i"] + p["b2i"]
    return ext, itn


if __name__ == "__main__":
    key = jax.random.PRNGKey(0)
    k_x, k_x2, k_p = jax.random.split(key, 3)

    B, STATE_DIM, ENC_DIM, HIDDEN = 16, 32, 64, 32
    states = jax.random.normal(k_x, (B, STATE_DIM), jnp.float32)
    params = init_params(k_p, STATE_DIM, ENC_DIM, HIDDEN)

    fwd = jax.jit(im_critic_forward, static_argnames=("block_batch", "compute_dtype"))

    # 1) f32 path, single batch tile.
    ext_v, int_v = fwd(states, params)
    jax.block_until_ready((ext_v, int_v))
    ext_ref, int_ref = reference_forward(states, params)
    assert ext_v.shape == (B, 1) and int_v.shape == (B, 1)
    assert jnp.allclose(ext_v, ext_ref, atol=1e-5, rtol=1e-5)
    assert jnp.allclose(int_v, int_ref, atol=1e-5, rtol=1e-5)

    # 2) f32 path, multi-step batch grid with batch padding (B not a multiple of the tile).
    B2 = 40
    states2 = jax.random.normal(k_x2, (B2, STATE_DIM), jnp.float32)
    ext2, int2 = fwd(states2, params, block_batch=16)
    jax.block_until_ready((ext2, int2))
    ext2_ref, int2_ref = reference_forward(states2, params)
    assert ext2.shape == (B2, 1) and int2.shape == (B2, 1)
    assert jnp.allclose(ext2, ext2_ref, atol=1e-5, rtol=1e-5)
    assert jnp.allclose(int2, int2_ref, atol=1e-5, rtol=1e-5)

    # 3) bf16 matmul operands (v6e/v7x mode), f32 accumulation -> loose tolerance.
    ext_bf, int_bf = fwd(states, params, compute_dtype=jnp.bfloat16)
    jax.block_until_ready((ext_bf, int_bf))
    assert jnp.allclose(ext_bf, ext_ref, atol=5e-2, rtol=5e-2)
    assert jnp.allclose(int_bf, int_ref, atol=5e-2, rtol=5e-2)

    print("KERNEL_OK")
</pallas_src>

<mosaic_0001>
module attributes {stable_mosaic.version = 11 : i64} {
  func.func @kernel(%arg0: i32, %arg1: memref<16x128xf32, #tpu.memory_space<vmem>>, %arg2: memref<128x128xf32, #tpu.memory_space<vmem>>, %arg3: memref<1x128xf32, #tpu.memory_space<vmem>>, %arg4: memref<128x256xf32, #tpu.memory_space<vmem>>, %arg5: memref<1x256xf32, #tpu.memory_space<vmem>>, %arg6: memref<1x256xf32, #tpu.memory_space<vmem>>, %arg7: memref<1x2xf32, #tpu.memory_space<vmem>>, %arg8: memref<16x2xf32, #tpu.memory_space<vmem>>) attributes {dimension_semantics = [#tpu.dimension_semantics<parallel>], iteration_bounds = array<i64: 1>, scalar_prefetch = 0 : i64, scratch_operands = 0 : i64, tpu.core_type = #tpu.core_type<tc>, window_params = [{transform_indices = @transform_0, window_bounds = array<i64: 16, 128>}, {pipeline_mode = #tpu.pipeline_mode<synchronous>, transform_indices = @transform_1, window_bounds = array<i64: 128, 128>}, {pipeline_mode = #tpu.pipeline_mode<synchronous>, transform_indices = @transform_2, window_bounds = array<i64: 1, 128>}, {pipeline_mode = #tpu.pipeline_mode<synchronous>, transform_indices = @transform_3, window_bounds = array<i64: 128, 256>}, {pipeline_mode = #tpu.pipeline_mode<synchronous>, transform_indices = @transform_4, window_bounds = array<i64: 1, 256>}, {pipeline_mode = #tpu.pipeline_mode<synchronous>, transform_indices = @transform_5, window_bounds = array<i64: 1, 256>}, {pipeline_mode = #tpu.pipeline_mode<synchronous>, transform_indices = @transform_6, window_bounds = array<i64: 1, 2>}, {transform_indices = @transform_7, window_bounds = array<i64: 16, 2>}]} {
    %c0 = arith.constant 0 : index
    %c0_0 = arith.constant 0 : index
    %0 = vector.load %arg1[%c0, %c0_0] : memref<16x128xf32, #tpu.memory_space<vmem>>, vector<16x128xf32>
    %c0_1 = arith.constant 0 : index
    %c0_2 = arith.constant 0 : index
    %1 = vector.load %arg2[%c0_1, %c0_2] : memref<128x128xf32, #tpu.memory_space<vmem>>, vector<128x128xf32>
    %cst = arith.constant dense<0.000000e+00> : vector<16x128xf32>
    %2 = tpu.matmul %0, %1, %cst {dimension_numbers = #tpu.dot_dimension_numbers<[1], [0], [0], [1], [0, 0, 1, 1], [], []>} : vector<16x128xf32>, vector<128x128xf32>, vector<16x128xf32> -> vector<16x128xf32>
    %c0_3 = arith.constant 0 : index
    %c0_4 = arith.constant 0 : index
    %3 = vector.load %arg3[%c0_3, %c0_4] : memref<1x128xf32, #tpu.memory_space<vmem>>, vector<1x128xf32>
    %4 = vector.broadcast %3 : vector<1x128xf32> to vector<16x128xf32>
    %5 = arith.addf %2, %4 : vector<16x128xf32>
    %cst_5 = arith.constant 0.000000e+00 : f32
    %6 = vector.broadcast %cst_5 : f32 to vector<16x128xf32>
    %7 = arith.maximumf %5, %6 : vector<16x128xf32>
    %c0_6 = arith.constant 0 : index
    %c0_7 = arith.constant 0 : index
    %8 = vector.load %arg4[%c0_6, %c0_7] : memref<128x256xf32, #tpu.memory_space<vmem>>, vector<128x256xf32>
    %cst_8 = arith.constant dense<0.000000e+00> : vector<16x256xf32>
    %9 = tpu.matmul %7, %8, %cst_8 {dimension_numbers = #tpu.dot_dimension_numbers<[1], [0], [0], [1], [0, 0, 1, 1], [], []>} : vector<16x128xf32>, vector<128x256xf32>, vector<16x256xf32> -> vector<16x256xf32>
    %c0_9 = arith.constant 0 : index
    %c0_10 = arith.constant 0 : index
    %10 = vector.load %arg5[%c0_9, %c0_10] : memref<1x256xf32, #tpu.memory_space<vmem>>, vector<1x256xf32>
    %11 = vector.broadcast %10 : vector<1x256xf32> to vector<16x256xf32>
    %12 = arith.addf %9, %11 : vector<16x256xf32>
    %cst_11 = arith.constant 0.000000e+00 : f32
    %13 = vector.broadcast %cst_11 : f32 to vector<16x256xf32>
    %14 = arith.maximumf %12, %13 : vector<16x256xf32>
    %c0_12 = arith.constant 0 : index
    %c0_13 = arith.constant 0 : index
    %15 = vector.load %arg6[%c0_12, %c0_13] : memref<1x256xf32, #tpu.memory_space<vmem>>, vector<1x256xf32>
    %16 = vector.broadcast %15 : vector<1x256xf32> to vector<16x256xf32>
    %17 = arith.mulf %14, %16 : vector<16x256xf32>
    %18 = vector.extract_strided_slice %17 {offsets = [0, 0], sizes = [16, 128], strides = [1, 1]} : vector<16x256xf32> to vector<16x128xf32>
    %cst_14 = arith.constant dense<0.000000e+00> : vector<16xf32>
    %19 = vector.multi_reduction <add>, %18, %cst_14 [1] : vector<16x128xf32> to vector<16xf32>
    %20 = vector.shape_cast %19 : vector<16xf32> to vector<16x1xf32>
    %c0_15 = arith.constant 0 : index
    %c0_16 = arith.constant 0 : index
    %21 = vector.load %arg7[%c0_15, %c0_16] : memref<1x2xf32, #tpu.memory_space<vmem>>, vector<1x1xf32>
    %22 = vector.broadcast %21 : vector<1x1xf32> to vector<16x1xf32>
    %23 = arith.addf %20, %22 : vector<16x1xf32>
    %24 = vector.extract_strided_slice %17 {offsets = [0, 128], sizes = [16, 128], strides = [1, 1]} : vector<16x256xf32> to vector<16x128xf32>
    %cst_17 = arith.constant dense<0.000000e+00> : vector<16xf32>
    %25 = vector.multi_reduction <add>, %24, %cst_17 [1] : vector<16x128xf32> to vector<16xf32>
    %26 = vector.shape_cast %25 : vector<16xf32> to vector<16x1xf32>
    %c0_18 = arith.constant 0 : index
    %c1 = arith.constant 1 : index
    %27 = vector.load %arg7[%c0_18, %c1] : memref<1x2xf32, #tpu.memory_space<vmem>>, vector<1x1xf32>
    %28 = vector.broadcast %27 : vector<1x1xf32> to vector<16x1xf32>
    %29 = arith.addf %26, %28 : vector<16x1xf32>
    %c0_19 = arith.constant 0 : index
    %c0_20 = arith.constant 0 : index
    %30 = vector.load %arg8[%c0_19, %c0_20] : memref<16x2xf32, #tpu.memory_space<vmem>>, vector<16x1xf32>
    tpu.vector_store %arg8[%c0_19, %c0_20], %23 {strides = array<i32>} : memref<16x2xf32, #tpu.memory_space<vmem>>, vector<16x1xf32>,
    %c0_21 = arith.constant 0 : index
    %c1_22 = arith.constant 1 : index
    %31 = vector.load %arg8[%c0_21, %c1_22] : memref<16x2xf32, #tpu.memory_space<vmem>>, vector<16x1xf32>
    tpu.vector_store %arg8[%c0_21, %c1_22], %29 {strides = array<i32>} : memref<16x2xf32, #tpu.memory_space<vmem>>, vector<16x1xf32>,
    return
  }
  func.func @transform_0(%arg0: i32) -> (i32, i32) {
    %c0_i32 = arith.constant 0 : i32
    %c0_i32_0 = arith.constant 0 : i32
    return %arg0, %c0_i32 : i32, i32
  }
  func.func @transform_1(%arg0: i32) -> (i32, i32) {
    %c0_i32 = arith.constant 0 : i32
    %c0_i32_0 = arith.constant 0 : i32
    %c0_i32_1 = arith.constant 0 : i32
    return %c0_i32, %c0_i32_0 : i32, i32
  }
  func.func @transform_2(%arg0: i32) -> (i32, i32) {
    %c0_i32 = arith.constant 0 : i32
    %c0_i32_0 = arith.constant 0 : i32
    %c0_i32_1 = arith.constant 0 : i32
    return %c0_i32, %c0_i32_0 : i32, i32
  }
  func.func @transform_3(%arg0: i32) -> (i32, i32) {
    %c0_i32 = arith.constant 0 : i32
    %c0_i32_0 = arith.constant 0 : i32
    %c0_i32_1 = arith.constant 0 : i32
    return %c0_i32, %c0_i32_0 : i32, i32
  }
  func.func @transform_4(%arg0: i32) -> (i32, i32) {
    %c0_i32 = arith.constant 0 : i32
    %c0_i32_0 = arith.constant 0 : i32
    %c0_i32_1 = arith.constant 0 : i32
    return %c0_i32, %c0_i32_0 : i32, i32
  }
  func.func @transform_5(%arg0: i32) -> (i32, i32) {
    %c0_i32 = arith.constant 0 : i32
    %c0_i32_0 = arith.constant 0 : i32
    %c0_i32_1 = arith.constant 0 : i32
    return %c0_i32, %c0_i32_0 : i32, i32
  }
  func.func @transform_6(%arg0: i32) -> (i32, i32) {
    %c0_i32 = arith.constant 0 : i32
    %c0_i32_0 = arith.constant 0 : i32
    %c0_i32_1 = arith.constant 0 : i32
    return %c0_i32, %c0_i32_0 : i32, i32
  }
  func.func @transform_7(%arg0: i32) -> (i32, i32) {
    %c0_i32 = arith.constant 0 : i32
    %c0_i32_0 = arith.constant 0 : i32
    return %arg0, %c0_i32 : i32, i32
  }
}

</mosaic_0001>

<bundles_post_ra>
// kernel: im_critic_forward.1
= control target key start
LH: loop header
LB: loop body
LE: loop exit
PB: predicated region body
PF: predicated region fallthrough
CT: control target
= control target key end

     0   :  { %vm288_vm0 = vcmask 7168   ;;  %vm291_vm1 = vcmask 15368   ;;  %s633_s1 = inlined_call_operand.vmem [shape: f32[128,128], index: 1, kind: input, shape index: {}]   ;;  %s634_s0 = inlined_call_operand.vmem [shape: f32[16,128], index: 0, kind: input, shape index: {}]   ;;  %s635_s3 = inlined_call_operand.vmem [shape: f32[128,256], index: 3, kind: input, shape index: {}]   ;;  %s636_s2 = inlined_call_operand.vmem [shape: f32[1,128], index: 2, kind: input, shape index: {}]   ;;  %s637_s4 = inlined_call_operand.vmem [shape: f32[1,256], index: 4, kind: input, shape index: {}]   ;;  %s638_s5 = inlined_call_operand.vmem [shape: f32[1,256], index: 5, kind: input, shape index: {}]   ;;  %s639_s6 = inlined_call_operand.vmem [shape: f32[1,2], index: 6, kind: input, shape index: {}]   ;;  %s640_s7 = inlined_call_operand.vmem [shape: f32[16,2], index: 7, kind: output, shape index: {}]  }
   0x1   :  { %v28_v0 = vld [vmem:[%s633_s1] sm:$0xff]  ;;  %v29_v1 = vld [vmem:[%s633_s1 + $0x8] sm:$0xff]  ;;  %v30_v2 = vld [vmem:[%s633_s1 + $0x10] sm:$0xff] }
   0x2   :  { %v353_v3 = vpack.c.bf16 %v29_v1, %v28_v0  ;;  %v31_v4 = vld [vmem:[%s633_s1 + $0x18] sm:$0xff]  ;;  %v32_v6 = vld [vmem:[%s633_s1 + $0x20] sm:$0xff]  ;;  %v33_v7 = vld [vmem:[%s633_s1 + $0x28] sm:$0xff] }
   0x3   :  { %v357_v5 = vpack.c.bf16 %v31_v4, %v30_v2  ;;  %v361_v8 = vpack.c.bf16 %v33_v7, %v32_v6  ;;  %v34_v9 = vld [vmem:[%s633_s1 + $0x30] sm:$0xff]  ;;  %v35_v10 = vld [vmem:[%s633_s1 + $0x38] sm:$0xff]  ;;  %v26_v11 = vld [vmem:[%s634_s0] sm:$0xff] }
   0x4   :  { %354 = vmatprep.subr.bf16.mxu0 %v353_v3  ;;  %350 = vmatprep.mubr.f32.mxu0 %v26_v11  ;;  %v129_v12 = vld [vmem:[%s635_s3 + $0x8] sm:$0xff]  ;;  %v131_v13 = vld [vmem:[%s635_s3 + $0x18] sm:$0xff]  ;;  %v128_v14 = vld [vmem:[%s635_s3] sm:$0xff]  ;;  %v365_v24 = vpack.c.bf16 %v35_v10, %v34_v9  ;;  %v418_v10 = vmov 0.0  }
   0x5   :  { %356 = vmatpush3.bf16.msra.mxu0 %v353_v3  ;;  %v385_v15 = vpack.c.bf16 %v131_v13, %v129_v12  ;;  %v130_v16 = vld [vmem:[%s635_s3 + $0x10] sm:$0xff]  ;;  %v133_v17 = vld [vmem:[%s635_s3 + $0x28] sm:$0xff]  ;;  %v135_v18 = vld [vmem:[%s635_s3 + $0x38] sm:$0xff]  ;;  %236 = vmatprep.mubr.f32.mxu1 %v418_v10 }
   0x6   :  { %358 = vmatprep.subr.bf16.mxu0 %v357_v5  ;;  %v387_v19 = vpack.c.bf16 %v130_v16, %v128_v14  ;;  %v389_v20 = vpack.c.bf16 %v135_v18, %v133_v17  ;;  %v132_v21 = vld [vmem:[%s635_s3 + $0x20] sm:$0xff]  ;;  %v134_v22 = vld [vmem:[%s635_s3 + $0x30] sm:$0xff]  ;;  %v137_v23 = vld [vmem:[%s635_s3 + $0x48] sm:$0xff]  ;;  %v162_v18 = vlaneseq }
   0x7   :  { %386 = vmatprep.subr.bf16.mxu1 %v385_v15  ;;  %v139_v25 = vld [vmem:[%s635_s3 + $0x58] sm:$0xff]  ;;  %v36_v26 = vld [vmem:[%s633_s1 + $0x40] sm:$0xff]  ;;  %v37_v27 = vld [vmem:[%s633_s1 + $0x48] sm:$0xff]  ;;  %v391_v28 = vpack.c.bf16 %v134_v22, %v132_v21 }
   0x8   :  { %388 = vmatpush1.bf16.msra.mxu1 %v387_v19  ;;  %v393_v29 = vpack.c.bf16 %v139_v25, %v137_v23  ;;  %v136_v30 = vld [vmem:[%s635_s3 + $0x40] sm:$0xff]  ;;  %v138_v31 = vld [vmem:[%s635_s3 + $0x50] sm:$0xff]  ;;  %v141_v32 = vld [vmem:[%s635_s3 + $0x68] sm:$0xff]  ;;  %v369_v34 = vpack.c.bf16 %v37_v27, %v36_v26  ;;  %v163_v19 = vshrl.u32 %v162_v18, 7 }
   0x9   :  { %360 = vmatpush3.bf16.msra.mxu0 %v357_v5  ;;  %390 = vmatprep.subr.bf16.mxu1 %v389_v20  ;;  %v143_v33 = vld [vmem:[%s635_s3 + $0x78] sm:$0xff]  ;;  %v38_v35 = vld [vmem:[%s633_s1 + $0x50] sm:$0xff]  ;;  %v395_v37 = vpack.c.bf16 %v138_v31, %v136_v30  ;;  %v140_v39 = vld [vmem:[%s635_s3 + $0x60] sm:$0xff] }
   0xa   :  { %362 = vmatprep.subr.bf16.mxu0 %v361_v8  ;;  %v39_v36 = vld [vmem:[%s633_s1 + $0x58] sm:$0xff]  ;;  %v397_v38 = vpack.c.bf16 %v143_v33, %v141_v32  ;;  %v142_v40 = vld [vmem:[%s635_s3 + $0x70] sm:$0xff]  ;;  %v145_v41 = vld [vmem:[%s635_s3 + $0x88] sm:$0xff]  ;;  %v164_v20 = vsub.s32 0, %v163_v19  ;;  %v168_v22 = vsub.s32 1, %v163_v19 }
   0xb   :  { %v147_v42 = vld [vmem:[%s635_s3 + $0x98] sm:$0xff]  ;;  %v373_v43 = vpack.c.bf16 %v39_v36, %v38_v35  ;;  %v40_v44 = vld [vmem:[%s633_s1 + $0x60] sm:$0xff]  ;;  %v41_v45 = vld [vmem:[%s633_s1 + $0x68] sm:$0xff]  ;;  %v399_v46 = vpack.c.bf16 %v142_v40, %v140_v39 }
   0xc   :  { %392 = vmatpush1.bf16.msra.mxu1 %v391_v28  ;;  %v401_v47 = vpack.c.bf16 %v147_v42, %v145_v41  ;;  %v144_v48 = vld [vmem:[%s635_s3 + $0x80] sm:$0xff]  ;;  %v146_v49 = vld [vmem:[%s635_s3 + $0x90] sm:$0xff]  ;;  %v149_v50 = vld [vmem:[%s635_s3 + $0xa8] sm:$0xff]  ;;  %v377_v52 = vpack.c.bf16 %v41_v45, %v40_v44 }
   0xd   :  { %364 = vmatpush3.bf16.msra.mxu0 %v361_v8  ;;  %394 = vmatprep.subr.bf16.mxu1 %v393_v29  ;;  %v151_v51 = vld [vmem:[%s635_s3 + $0xb8] sm:$0xff]  ;;  %v42_v53 = vld [vmem:[%s633_s1 + $0x70] sm:$0xff]  ;;  %v403_v55 = vpack.c.bf16 %v146_v49, %v144_v48  ;;  %v148_v57 = vld [vmem:[%s635_s3 + $0xa0] sm:$0xff] }
   0xe   :  { %366 = vmatprep.subr.bf16.mxu0 %v365_v24  ;;  %v43_v54 = vld [vmem:[%s633_s1 + $0x78] sm:$0xff]  ;;  %v405_v56 = vpack.c.bf16 %v151_v51, %v149_v50  ;;  %v150_v58 = vld [vmem:[%s635_s3 + $0xb0] sm:$0xff]  ;;  %v153_v59 = vld [vmem:[%s635_s3 + $0xc8] sm:$0xff] }
   0xf   :  { %v155_v60 = vld [vmem:[%s635_s3 + $0xd8] sm:$0xff]  ;;  %v381_v61 = vpack.c.bf16 %v43_v54, %v42_v53  ;;  %v407_v62 = vpack.c.bf16 %v150_v58, %v148_v57  ;;  %v152_v0 = vld [vmem:[%s635_s3 + $0xc0] sm:$0xff]  ;;  %v154_v1 = vld [vmem:[%s635_s3 + $0xd0] sm:$0xff] }
  0x10   :  { %396 = vmatpush1.bf16.msra.mxu1 %v395_v37  ;;  %v409_v63 = vpack.c.bf16 %v155_v60, %v153_v59  ;;  %v411_v2 = vpack.c.bf16 %v154_v1, %v152_v0  ;;  %v27_v3 = vld [vmem:[%s634_s0 + $0x8] sm:$0xff]  ;;  %v159_v5 = vld [vmem:[%s635_s3 + $0xf8] sm:$0xff]  ;;  %v156_v7 = vld [vmem:[%s635_s3 + $0xe0] sm:$0xff] }
  0x11   :  { %368 = vmatpush3.bf16.msra.mxu0 %v365_v24  ;;  %398 = vmatprep.subr.bf16.mxu1 %v397_v38  ;;  %v157_v4 = vld [vmem:[%s635_s3 + $0xe8] sm:$0xff]  ;;  %v158_v8 = vld [vmem:[%s635_s3 + $0xf0] sm:$0xff]  ;;  %v298_v11 = vld [vmem:[%s636_s2] ss:$0 sm:$0xff] }
  0x12   :  { %370 = vmatprep.subr.bf16.mxu0 %v369_v34  ;;  %v413_v6 = vpack.c.bf16 %v159_v5, %v157_v4  ;;  %v415_v9 = vpack.c.bf16 %v158_v8, %v156_v7  ;;  %v160_v21 = vld [vmem:[%s637_s4] sm:$0x3] }
  0x13   :  { %v165_v23 = vrot.slane %v160_v21, %v164_v20  ;;  %v169_v24 = vrot.slane %v160_v21, %v168_v22  ;;  %v253_v25 = vld [vmem:[%s638_s5] sm:$0x3] }
  0x14   :  { %400 = vmatpush1.bf16.msra.mxu1 %v399_v46  ;;  %v258_v29 = vrot.slane %v253_v25, %v164_v20  ;;  %v262_v31 = vrot.slane %v253_v25, %v168_v22  ;;  %v299_v44 = vld [vmem:[%s639_s6] ss:$0 sm:$0xff] }
  0x15   :  { %372 = vmatpush3.bf16.msra.mxu0 %v369_v34  ;;  %402 = vmatprep.subr.bf16.mxu1 %v401_v47 }
  0x16   :  { %374 = vmatprep.subr.bf16.mxu0 %v373_v43 }
  0x18   :  { %404 = vmatpush1.bf16.msra.mxu1 %v403_v55 }
  0x19   :  { %376 = vmatpush3.bf16.msra.mxu0 %v373_v43  ;;  %406 = vmatprep.subr.bf16.mxu1 %v405_v56 }
  0x1a   :  { %378 = vmatprep.subr.bf16.mxu0 %v377_v52 }
  0x1c   :  { %408 = vmatpush1.bf16.msra.mxu1 %v407_v62 }
  0x1d   :  { %380 = vmatpush3.bf16.msra.mxu0 %v377_v52  ;;  %410 = vmatprep.subr.bf16.mxu1 %v409_v63 }
  0x1e   :  { %382 = vmatprep.subr.bf16.mxu0 %v381_v61 }
  0x20   :  { %412 = vmatpush1.bf16.msra.mxu1 %v411_v2 }
  0x21   :  { %384 = vmatpush3.bf16.msra.mxu0 %v381_v61  ;;  %414 = vmatprep.subr.bf16.mxu1 %v413_v6 }
  0x24   :  { %351 = vmatmul.mubr.f32.vlgmr.msra.gmra.mrb[0].mxu0 %v27_v3  ;;  %416 = vmatpush1.bf16.msra.mxu1 %v415_v9 }
  0xf7   :  { %v352_v12 = vpop.f32.mrb[0].mxu0 }
  0xf8   :  { %v117_v13 = vpop.f32.mrb[1].mxu0  ;;  %v123_v15 = vadd.f32 %v352_v12, %v298_v11 }
  0xf9   :  { %v118_v14 = vadd.f32 %v298_v11, %v117_v13 }
  0xfa   :  { %v127_v17 = vmax.f32 %v123_v15, 0.0 }
  0xfb   :  { %v126_v16 = vmax.f32 %v118_v14, 0.0 }
  0xfd   :  { %237 = vmatmul.mubr.f32.vlgmr.msra.gmra.mrb[0].mxu1 %v126_v16 }
  0xfe   :  { %242 = vmatprep.mubr.f32.mxu1 %v418_v10 }
 0x101   :  { %243 = vmatmul.mubr.f32.gmra.mrb[2].mxu1 %v127_v17 }
 0x1d0   :  { %v238_v26 = vpop.f32.mrb[0].mxu1 }
 0x1d1   :  { %v239_v27 = vadd.f32 %v238_v26, %v165_v23  ;;  %v240_v28 = vpop.f32.mrb[1].mxu1 }
 0x1d2   :  { %v241_v30 = vadd.f32 %v240_v28, %v169_v24 }
 0x1d3   :  { %v249_v32 = vmax.f32 %v239_v27, 0.0 }
 0x1d4   :  { %v250_v33 = vmax.f32 %v241_v30, 0.0  ;;  %v244_v34 = vpop.f32.mrb[2].mxu1 }
 0x1d5   :  { %v245_v35 = vadd.f32 %v244_v34, %v165_v23  ;;  %v246_v36 = vpop.f32.mrb[3].mxu1  ;;  %v265_v37 = vmul.f32 %v258_v29, %v249_v32 }
 0x1d6   :  { %v247_v38 = vadd.f32 %v246_v36, %v169_v24  ;;  %v266_v39 = vmul.f32 %v262_v31, %v250_v33 }
 0x1d7   :  { %v251_v40 = vmax.f32 %v245_v35, 0.0  ;;  %269 = vadd.xlane.f32.xlu0 %v265_v37 }
 0x1d8   :  { %v252_v41 = vmax.f32 %v247_v38, 0.0  ;;  %282 = vadd.xlane.f32.xlu1 %v266_v39 }
 0x1d9   :  { %v267_v42 = vmul.f32 %v258_v29, %v251_v40 }
 0x1da   :  { %v268_v43 = vmul.f32 %v262_v31, %v252_v41 }
 0x1db   :  { %271 = vadd.xlane.f32.xlu0 %v267_v42 }
 0x1dc   :  { %284 = vadd.xlane.f32.xlu1 %v268_v43 }
 0x264   :  { %v270_v45 = vpop.xlane.xlu0 %269 }
 0x265   :  { %v280_v46 = vadd.f32 %v299_v44, %v270_v45  ;;  %v283_v47 = vpop.xlane.xlu1 %282 }
 0x266   :  { %v286_v48 = vadd.f32 %v299_v44, %v283_v47 }
 0x267   :  { %289 = vst.msk [vmem:[%s640_s7] sm:$0xff] %vm288_vm0, %v280_v46 }
 0x268   :  { %292 = vst.msk [vmem:[%s640_s7] sm:$0xff] %vm291_vm1, %v286_v48  ;;  %v272_v49 = vpop.xlane.xlu0 %271 }
 0x269   :  { %v281_v50 = vadd.f32 %v299_v44, %v272_v49  ;;  %v285_v51 = vpop.xlane.xlu1 %284 }
 0x26a   :  { %v287_v52 = vadd.f32 %v299_v44, %v285_v51 }
 0x26b   :  { %290 = vst.msk [vmem:[%s640_s7 + $0x8] sm:$0xff] %vm288_vm0, %v281_v50 }
 0x26c   :  { %293 = vst.msk [vmem:[%s640_s7 + $0x8] sm:$0xff] %vm291_vm1, %v287_v52 }

</bundles_post_ra>
